<compile_context>
chip_gen: v7x
topology: tpu7x:2x2x1
jax: 0.10.0
libtpu: 0.0.40
codegen_flags: <defaults>
</compile_context>

<pallas_src>
import math
import jax
import jax.numpy as jnp
from jax.experimental import pallas as pl
from jax.experimental.pallas import tpu as pltpu

# ----------------------------- small config ---------------------------------
IMG_SIZE = 64
VAE_STRIDE = 16
PATCH_SIZE = 1
EMBED_DIM = 128
FREQ_DIM = 256
CLASS_NUM = 10
VAE_EMBED_DIM = 16
LEARN_SIGMA = False

SEQ_H = SEQ_W = IMG_SIZE // VAE_STRIDE // PATCH_SIZE          # 4
SEQ_LEN = SEQ_H * SEQ_W                                       # 16
TOKEN_EMBED_DIM = 16 * PATCH_SIZE ** 2                        # 16
OUT_CHANNELS = 16 * 2 if LEARN_SIGMA else 16                  # 16
OUT_DIM = OUT_CHANNELS * PATCH_SIZE ** 2                      # 16
OUT_PAD = 128                                                 # lane-dense store width
assert OUT_PAD == EMBED_DIM                                   # packed side-buffer width

MXU_DTYPE = jnp.bfloat16   # matmul-operand dtype (accumulation stays f32)

# ---- packed bf16 weight buffer: static row offsets (multiples of 16) --------
W_IN_OFF = 0                                    # input_proj   (16, 128)
W_T1_OFF = W_IN_OFF + TOKEN_EMBED_DIM           # t_mlp[0]     (256, 128) @ 16
W_T2_OFF = W_T1_OFF + FREQ_DIM                  # t_mlp[2]     (128, 128) @ 272
W_OUT_OFF = W_T2_OFF + EMBED_DIM                # output_proj  (128, 128) @ 400
W_ROWS = W_OUT_OFF + EMBED_DIM                  # 528

# ---- packed f32 side buffer: static row offsets (8-aligned) -----------------
ROW_POSB = 0                                    # pos_embed + in_bias  [0, 16)
ROW_B_OUT = 16                                  # output_proj bias (padded)
ROW_B1 = 24                                     # t_mlp[0] bias
ROW_B2 = 32                                     # t_mlp[2] bias
ROW_YTAB = 40                                   # class-embedding table [40, 56)
NCLS_PAD = ((CLASS_NUM + 1 + 7) // 8) * 8       # 16
SIDE_ROWS = ROW_YTAB + NCLS_PAD                 # 56


# ----------------------------- fused Pallas kernel ---------------------------
def _ddit_fused_kernel(
    x_ref,        # (B*S, Din)      bf16  patchified x_t
    tl_ref,       # (B, 2)          i32   column 0 = t, column 1 = labels
    w_ref,        # (W_ROWS, D)     bf16  packed weights (see offsets above)
    side_ref,     # (SIDE_ROWS, D)  f32   packed posb / biases / class table
    tok_out_ref,  # (B*S, OUT_PAD)  f32   token predictions, lane-dense padded
    c_out_ref,    # (B, D)          f32   conditioning c = t_emb + y_emb
):
    M = x_ref.shape[0]
    B = M // SEQ_LEN

    # ---- static views into the packed operands (zero-cost slices) ----------
    w_in = w_ref[W_IN_OFF:W_IN_OFF + TOKEN_EMBED_DIM, :]
    w1 = w_ref[W_T1_OFF:W_T1_OFF + FREQ_DIM, :]
    w2 = w_ref[W_T2_OFF:W_T2_OFF + EMBED_DIM, :]
    w_out = w_ref[W_OUT_OFF:W_OUT_OFF + EMBED_DIM, :]

    posb = side_ref[ROW_POSB:ROW_POSB + SEQ_LEN, :]            # (S, D)   f32
    b_out = side_ref[ROW_B_OUT:ROW_B_OUT + 1, :]               # (1, 128) f32
    b1 = side_ref[ROW_B1:ROW_B1 + 1, :]                        # (1, D)   f32
    b2 = side_ref[ROW_B2:ROW_B2 + 1, :]                        # (1, D)   f32
    y_tab = side_ref[ROW_YTAB:ROW_YTAB + NCLS_PAD, :]          # (16, D)  f32

    # ---- token path: input_proj + pos_embed -> (EBTAdaLN TODO) -> output_proj
    h = jnp.dot(x_ref[...], w_in, preferred_element_type=jnp.float32)  # (M, D)
    h = h + jnp.concatenate([posb] * B, axis=0)                # tile pos over batch
    # TODO(synk): EBTAdaLN transformer consumes (h, c) here; pass-through for now.
    tok_out_ref[...] = (
        jnp.dot(h.astype(w_ref.dtype), w_out, preferred_element_type=jnp.float32)
        + b_out
    )

    # ---- conditioning path: sinusoidal t-embedding + MLP + class embedding --
    t_col = tl_ref[:, 0:1].astype(jnp.float32)                 # (B, 1)
    lab_col = tl_ref[:, 1:2]                                   # (B, 1) i32

    half = FREQ_DIM // 2
    k = jax.lax.broadcasted_iota(jnp.int32, (1, half), 1).astype(jnp.float32)
    freqs = jnp.exp(k * (-math.log(10000.0) / half))           # (1, half) f32
    args = t_col * freqs                                       # (B, half)
    # FREQ_DIM is even -> no zero-pad branch needed
    t_freq = jnp.concatenate([jnp.cos(args), jnp.sin(args)], axis=-1)   # (B, F) f32

    g = jnp.dot(t_freq.astype(w_ref.dtype), w1, preferred_element_type=jnp.float32)
    g = g + b1
    g = g * jax.nn.sigmoid(g)                                  # SiLU in f32
    t_emb = (
        jnp.dot(g.astype(w_ref.dtype), w2, preferred_element_type=jnp.float32) + b2
    )

    cls_iota = jax.lax.broadcasted_iota(jnp.int32, (B, NCLS_PAD), 1)
    onehot = (lab_col == cls_iota).astype(jnp.float32)          # (B, 16) exact 0/1
    y_emb = jnp.dot(onehot, y_tab, preferred_element_type=jnp.float32)  # exact gather

    c_out_ref[...] = t_emb + y_emb


def _fused_forward(x_flat, tl, w_pack, side_pack):
    M = x_flat.shape[0]
    B = tl.shape[0]
    vmem = pl.BlockSpec(memory_space=pltpu.MemorySpace.VMEM)
    return pl.pallas_call(
        _ddit_fused_kernel,
        out_shape=(
            jax.ShapeDtypeStruct((M, OUT_PAD), jnp.float32),
            jax.ShapeDtypeStruct((B, EMBED_DIM), jnp.float32),
        ),
        in_specs=[vmem, vmem, vmem, vmem],
        out_specs=(vmem, vmem),
    )(x_flat, tl, w_pack, side_pack)


# ----------------------------- plain-JAX glue --------------------------------
def patchify(x, p):
    # (B, C, H, W) -> (B, h_*w_, C*p*p)   [torch einsum 'nchpwq->nhwcpq']
    b, c, h, w = x.shape
    if p == 1:
        return jnp.transpose(x.reshape(b, c, h * w), (0, 2, 1))
    h_, w_ = h // p, w // p
    x = x.reshape(b, c, h_, p, w_, p)
    x = jnp.transpose(x, (0, 2, 4, 1, 3, 5))
    return x.reshape(b, h_ * w_, c * p * p)


def unpatchify(x, p, c, h_, w_):
    # (B, h_*w_, c*p*p) -> (B, c, h_*p, w_*p)   [torch einsum 'nhwcpq->nchpwq']
    b = x.shape[0]
    x = x.reshape(b, h_, w_, c, p, p)
    x = jnp.transpose(x, (0, 3, 1, 4, 2, 5))
    return x.reshape(b, c, h_ * p, w_ * p)


def init_raw_params(key, zero_init_output_proj=True):
    """Mirrors DDiT.initialize_weights.

    Weights are stored (in, out) — i.e. the transpose of PyTorch nn.Linear — so
    the kernel computes x @ W directly.  To load reference / trained PyTorch
    weights, transpose the Linear weights into this layout and call pack_params.
    `zero_init_output_proj=True` matches the reference exactly
    (xavier_uniform_ with gain 0 == zeros); set False for a non-trivial smoke test.
    """
    ks = jax.random.split(key, 6)
    std = 0.02
    a_in = math.sqrt(6.0 / (TOKEN_EMBED_DIM + EMBED_DIM))       # xavier_uniform bound
    if zero_init_output_proj:
        out_w = jnp.zeros((EMBED_DIM, OUT_DIM), jnp.float32)
    else:
        out_w = std * jax.random.normal(ks[5], (EMBED_DIM, OUT_DIM), jnp.float32)
    return {
        "y_embed": std * jax.random.normal(ks[0], (CLASS_NUM + 1, EMBED_DIM), jnp.float32),
        "pos_embed": std * jax.random.normal(ks[1], (1, SEQ_LEN, EMBED_DIM), jnp.float32),
        "t_w1": std * jax.random.normal(ks[2], (FREQ_DIM, EMBED_DIM), jnp.float32),
        "t_b1": jnp.zeros((EMBED_DIM,), jnp.float32),           # torch default bias differs (random)
        "t_w2": std * jax.random.normal(ks[3], (EMBED_DIM, EMBED_DIM), jnp.float32),
        "t_b2": jnp.zeros((EMBED_DIM,), jnp.float32),
        "in_w": jax.random.uniform(ks[4], (TOKEN_EMBED_DIM, EMBED_DIM), jnp.float32, -a_in, a_in),
        "in_b": jnp.zeros((EMBED_DIM,), jnp.float32),
        "out_w": out_w,
        "out_b": jnp.zeros((OUT_DIM,), jnp.float32),
    }


def pack_params(raw):
    """One-time pre-cast / pre-pad / pack of parameters into kernel operands."""
    out_w_pad = jnp.zeros((EMBED_DIM, OUT_PAD), jnp.float32).at[:, :OUT_DIM].set(raw["out_w"])
    w_pack = jnp.concatenate(
        [raw["in_w"], raw["t_w1"], raw["t_w2"], out_w_pad], axis=0
    ).astype(MXU_DTYPE)                                          # (528, 128) bf16

    posb = raw["pos_embed"][0] + raw["in_b"][None, :]            # (S, D) f32
    out_b_pad = jnp.zeros((OUT_PAD,), jnp.float32).at[:OUT_DIM].set(raw["out_b"])
    side = jnp.zeros((SIDE_ROWS, EMBED_DIM), jnp.float32)
    side = side.at[ROW_POSB:ROW_POSB + SEQ_LEN].set(posb)
    side = side.at[ROW_B_OUT].set(out_b_pad)
    side = side.at[ROW_B1].set(raw["t_b1"])
    side = side.at[ROW_B2].set(raw["t_b2"])
    side = side.at[ROW_YTAB:ROW_YTAB + CLASS_NUM + 1].set(raw["y_embed"])
    return {"w_pack": w_pack, "side_pack": side}


def ddit_forward_impl(params, x, t, x_start, labels):
    """Mirror of DDiT._forward_impl (eval mode, no label dropout).

    Note: the reference also computes input_proj(patchify(x_start)) but never
    consumes it downstream; that dead projection is skipped here.  The
    cat([real, pred])[:, S:, :] round-trip is an identity on the second half and
    is likewise elided (transformer pass-through until EBTAdaLN lands).
    """
    B = x.shape[0]
    del x_start  # accepted for signature parity only (dead in the reference path)

    # patchify(p=1) == channel-last; fuse transpose + flatten + bf16 convert
    x_flat = patchify(x, PATCH_SIZE).reshape(B * SEQ_LEN, TOKEN_EMBED_DIM).astype(MXU_DTYPE)
    tl = jnp.stack([t.astype(jnp.int32), labels.astype(jnp.int32)], axis=1)  # (B, 2)

    tok_pad, c = _fused_forward(x_flat, tl, params["w_pack"], params["side_pack"])
    del c  # TODO(synk): feed c into the EBTAdaLN transformer once available.

    token_preds = tok_pad[:, :OUT_DIM].reshape(B, SEQ_LEN, OUT_DIM)
    final_output = unpatchify(token_preds, PATCH_SIZE, OUT_CHANNELS, SEQ_H, SEQ_W)
    return final_output                                          # (B, C_out, H, W)


if __name__ == "__main__":
    key = jax.random.PRNGKey(0)
    k_params, k_x, k_xt, k_lab, k_t = jax.random.split(key, 5)

    # zero_init_output_proj=False -> deterministic, non-trivial output for the
    # smoke test (reference init would make output_proj identically zero).
    raw = init_raw_params(k_params, zero_init_output_proj=False)
    params = pack_params(raw)

    B = 2
    H = W = IMG_SIZE // VAE_STRIDE                               # 4
    x_start = jax.random.normal(k_x, (B, VAE_EMBED_DIM, H, W), jnp.float32)
    x_noisy = jax.random.normal(k_xt, (B, VAE_EMBED_DIM, H, W), jnp.float32)
    labels = jax.random.randint(k_lab, (B,), 0, CLASS_NUM)
    t = jax.random.randint(k_t, (B,), 0, 100)

    out = jax.jit(ddit_forward_impl)(params, x_noisy, t, x_start, labels)
    out = jax.block_until_ready(out)
    assert out.shape == (B, OUT_CHANNELS, H, W), out.shape
    assert jnp.all(jnp.isfinite(out))
    print("KERNEL_OK")
</pallas_src>

<mosaic_0001>
module attributes {stable_mosaic.version = 11 : i64} {
  func.func @_ddit_fused_kernel(%arg0: memref<32x16xbf16, #tpu.memory_space<vmem>>, %arg1: memref<2x2xi32, #tpu.memory_space<vmem>>, %arg2: memref<528x128xbf16, #tpu.memory_space<vmem>>, %arg3: memref<56x128xf32, #tpu.memory_space<vmem>>, %arg4: memref<32x128xf32, #tpu.memory_space<vmem>>, %arg5: memref<2x128xf32, #tpu.memory_space<vmem>>) attributes {dimension_semantics = [], scalar_prefetch = 0 : i64, scratch_operands = 0 : i64, tpu.core_type = #tpu.core_type<tc>} {
    %c0 = arith.constant 0 : index
    %c0_0 = arith.constant 0 : index
    %0 = vector.load %arg2[%c0, %c0_0] : memref<528x128xbf16, #tpu.memory_space<vmem>>, vector<16x128xbf16>
    %c16 = arith.constant 16 : index
    %c0_1 = arith.constant 0 : index
    %1 = vector.load %arg2[%c16, %c0_1] : memref<528x128xbf16, #tpu.memory_space<vmem>>, vector<256x128xbf16>
    %c272 = arith.constant 272 : index
    %c0_2 = arith.constant 0 : index
    %2 = vector.load %arg2[%c272, %c0_2] : memref<528x128xbf16, #tpu.memory_space<vmem>>, vector<128x128xbf16>
    %c400 = arith.constant 400 : index
    %c0_3 = arith.constant 0 : index
    %3 = vector.load %arg2[%c400, %c0_3] : memref<528x128xbf16, #tpu.memory_space<vmem>>, vector<128x128xbf16>
    %c0_4 = arith.constant 0 : index
    %c0_5 = arith.constant 0 : index
    %4 = vector.load %arg3[%c0_4, %c0_5] : memref<56x128xf32, #tpu.memory_space<vmem>>, vector<16x128xf32>
    %c16_6 = arith.constant 16 : index
    %c0_7 = arith.constant 0 : index
    %5 = vector.load %arg3[%c16_6, %c0_7] : memref<56x128xf32, #tpu.memory_space<vmem>>, vector<1x128xf32>
    %c24 = arith.constant 24 : index
    %c0_8 = arith.constant 0 : index
    %6 = vector.load %arg3[%c24, %c0_8] : memref<56x128xf32, #tpu.memory_space<vmem>>, vector<1x128xf32>
    %c32 = arith.constant 32 : index
    %c0_9 = arith.constant 0 : index
    %7 = vector.load %arg3[%c32, %c0_9] : memref<56x128xf32, #tpu.memory_space<vmem>>, vector<1x128xf32>
    %c40 = arith.constant 40 : index
    %c0_10 = arith.constant 0 : index
    %8 = vector.load %arg3[%c40, %c0_10] : memref<56x128xf32, #tpu.memory_space<vmem>>, vector<16x128xf32>
    %c0_11 = arith.constant 0 : index
    %c0_12 = arith.constant 0 : index
    %9 = vector.load %arg0[%c0_11, %c0_12] : memref<32x16xbf16, #tpu.memory_space<vmem>>, vector<32x16xbf16>
    %cst = arith.constant dense<0.000000e+00> : vector<32x128xf32>
    %10 = tpu.matmul %9, %0, %cst {dimension_numbers = #tpu.dot_dimension_numbers<[1], [0], [0], [1], [0, 0, 1, 1], [], []>} : vector<32x16xbf16>, vector<16x128xbf16>, vector<32x128xf32> -> vector<32x128xf32>
    %11 = tpu.concatenate %4, %4 in 0 : vector<16x128xf32>, vector<16x128xf32> -> vector<32x128xf32>
    %12 = arith.addf %10, %11 : vector<32x128xf32>
    %13 = arith.truncf %12 : vector<32x128xf32> to vector<32x128xbf16>
    %cst_13 = arith.constant dense<0.000000e+00> : vector<32x128xf32>
    %14 = tpu.matmul %13, %3, %cst_13 {dimension_numbers = #tpu.dot_dimension_numbers<[1], [0], [0], [1], [0, 0, 1, 1], [], []>} : vector<32x128xbf16>, vector<128x128xbf16>, vector<32x128xf32> -> vector<32x128xf32>
    %15 = vector.broadcast %5 : vector<1x128xf32> to vector<32x128xf32>
    %16 = arith.addf %14, %15 : vector<32x128xf32>
    %c0_14 = arith.constant 0 : index
    %c0_15 = arith.constant 0 : index
    %17 = vector.load %arg4[%c0_14, %c0_15] : memref<32x128xf32, #tpu.memory_space<vmem>>, vector<32x128xf32>
    tpu.vector_store %arg4[%c0_14, %c0_15], %16 {strides = array<i32>} : memref<32x128xf32, #tpu.memory_space<vmem>>, vector<32x128xf32>,
    %c0_16 = arith.constant 0 : index
    %c0_17 = arith.constant 0 : index
    %18 = vector.load %arg1[%c0_16, %c0_17] : memref<2x2xi32, #tpu.memory_space<vmem>>, vector<2x1xi32>
    %19 = arith.sitofp %18 : vector<2x1xi32> to vector<2x1xf32>
    %c0_18 = arith.constant 0 : index
    %c1 = arith.constant 1 : index
    %20 = vector.load %arg1[%c0_18, %c1] : memref<2x2xi32, #tpu.memory_space<vmem>>, vector<2x1xi32>
    %21 = tpu.iota {dimensions = array<i32: 1>} : vector<1x128xi32>
    %22 = arith.sitofp %21 : vector<1x128xi32> to vector<1x128xf32>
    %cst_19 = arith.constant -0.0719557852 : f32
    %23 = vector.broadcast %cst_19 : f32 to vector<1x128xf32>
    %24 = arith.mulf %22, %23 : vector<1x128xf32>
    %25 = math.exp %24 : vector<1x128xf32>
    %26 = vector.broadcast %19 : vector<2x1xf32> to vector<2x128xf32>
    %27 = vector.broadcast %25 : vector<1x128xf32> to vector<2x128xf32>
    %28 = arith.mulf %26, %27 : vector<2x128xf32>
    %29 = math.cos %28 : vector<2x128xf32>
    %30 = math.sin %28 : vector<2x128xf32>
    %31 = tpu.concatenate %29, %30 in 1 : vector<2x128xf32>, vector<2x128xf32> -> vector<2x256xf32>
    %32 = arith.truncf %31 : vector<2x256xf32> to vector<2x256xbf16>
    %cst_20 = arith.constant dense<0.000000e+00> : vector<2x128xf32>
    %33 = tpu.matmul %32, %1, %cst_20 {dimension_numbers = #tpu.dot_dimension_numbers<[1], [0], [0], [1], [0, 0, 1, 1], [], []>} : vector<2x256xbf16>, vector<256x128xbf16>, vector<2x128xf32> -> vector<2x128xf32>
    %34 = vector.broadcast %6 : vector<1x128xf32> to vector<2x128xf32>
    %35 = arith.addf %33, %34 : vector<2x128xf32>
    %36 = arith.negf %35 : vector<2x128xf32>
    %37 = math.exp %36 : vector<2x128xf32>
    %cst_21 = arith.constant 1.000000e+00 : f32
    %38 = vector.broadcast %cst_21 : f32 to vector<2x128xf32>
    %39 = arith.addf %38, %37 : vector<2x128xf32>
    %40 = arith.divf %38, %39 : vector<2x128xf32>
    %41 = arith.mulf %35, %40 : vector<2x128xf32>
    %42 = arith.truncf %41 : vector<2x128xf32> to vector<2x128xbf16>
    %cst_22 = arith.constant dense<0.000000e+00> : vector<2x128xf32>
    %43 = tpu.matmul %42, %2, %cst_22 {dimension_numbers = #tpu.dot_dimension_numbers<[1], [0], [0], [1], [0, 0, 1, 1], [], []>} : vector<2x128xbf16>, vector<128x128xbf16>, vector<2x128xf32> -> vector<2x128xf32>
    %44 = vector.broadcast %7 : vector<1x128xf32> to vector<2x128xf32>
    %45 = arith.addf %43, %44 : vector<2x128xf32>
    %46 = tpu.iota {dimensions = array<i32: 1>} : vector<2x16xi32>
    %47 = vector.broadcast %20 : vector<2x1xi32> to vector<2x16xi32>
    %48 = arith.cmpi eq, %47, %46 : vector<2x16xi32>
    %49 = arith.extui %48 : vector<2x16xi1> to vector<2x16xi32>
    %50 = arith.sitofp %49 : vector<2x16xi32> to vector<2x16xf32>
    %cst_23 = arith.constant dense<0.000000e+00> : vector<2x128xf32>
    %51 = tpu.matmul %50, %8, %cst_23 {dimension_numbers = #tpu.dot_dimension_numbers<[1], [0], [0], [1], [0, 0, 1, 1], [], []>} : vector<2x16xf32>, vector<16x128xf32>, vector<2x128xf32> -> vector<2x128xf32>
    %52 = arith.addf %45, %51 : vector<2x128xf32>
    %c0_24 = arith.constant 0 : index
    %c0_25 = arith.constant 0 : index
    %53 = vector.load %arg5[%c0_24, %c0_25] : memref<2x128xf32, #tpu.memory_space<vmem>>, vector<2x128xf32>
    tpu.vector_store %arg5[%c0_24, %c0_25], %52 {strides = array<i32>} : memref<2x128xf32, #tpu.memory_space<vmem>>, vector<2x128xf32>,
    return
  }
}

</mosaic_0001>

<bundles_post_ra>
// kernel: ddit_forward_impl.1
= control target key start
LH: loop header
LB: loop body
LE: loop exit
PB: predicated region body
PF: predicated region fallthrough
CT: control target
= control target key end

     0   :  { %11 = vsyncpa [#allocation3], 0  ;;  %s1304_s0 = inlined_call_operand.vmem [shape: bf16[32,16], index: 0, kind: input, shape index: {}]   ;;  %s1305_s1 = inlined_call_operand.vmem [shape: s32[2,2], index: 1, kind: input, shape index: {}]   ;;  %s1306_s2 = inlined_call_operand.hbm [shape: bf16[528,128], index: 2, kind: input, shape index: {}]   ;;  %s1307_s3 = inlined_call_operand.vmem [shape: f32[56,128], index: 3, kind: input, shape index: {}]   ;;  %s1308_s4 = inlined_call_operand.hbm [shape: f32[32,128], index: 4, kind: output, shape index: {0}]   ;;  %s1309_s5 = inlined_call_operand.hbm [shape: f32[2,128], index: 5, kind: output, shape index: {1}]  }
   0x1   :  { %12 = vsyncpa [#allocation4], 0 }
   0x2   :  { %13 = vsyncpa [#allocation7], 0  ;;  %s1162_s18 = smov [#allocation2]   ;;  %s1090_s22 = scalar_lea.hbm %s1306_s2, 4224 }
   0x3   :  { %s23_s19 = sshll.u32 %s1162_s18, 4  ;;  %p1091_p0 = scmp.ne.s32.totalorder %s1306_s2, %s1090_s22  ;;  %s24_s19 = int_to_ptr.vmem [resolvable:$true] %s23_s19 }
   0x4   :  { %p1094_p1 = scmp.lt.u32.totalorder %s1090_s22, %s1306_s2 }
   0x6   :  { %p1096_p2 = pnand %p1094_p1, %p1091_p0 }
   0x8   :  { %1099 = shalt.err (!%p1096_p2)
}
   0x9   :  { %s1100_s27 = scalar_lea.vmem %s24_s19, 4224  ;;  %p1105_p4 = scmp.lt.s32.totalorder %s24_s19, %s24_s19 }
   0xa   :  { %p1101_p3 = scmp.ne.s32.totalorder %s24_s19, %s1100_s27  ;;  %p1106_p5 = scmp.lt.s32.totalorder %s1100_s27, %s1100_s27 }
   0xc   :  { %p1107_p6 = por %p1106_p5, %p1105_p4 }
   0xe   :  { %p1108_p7 = pnand %p1107_p6, %p1101_p3 }
  0x10   :  { %1111 = shalt.err (!%p1108_p7)
}
  0x11   :  { %s1163_s28 = smov 64   ;;  %s1164_s29 = smov 4  }
  0x12   :  { %29 = dma.hbm_to_vmem [thread:$0]  %s1306_s2, 4224, %s24_s19, [#allocation3], %s1163_s28, %s1163_s28, %s1164_s29  }
  0x13   :  { %1156 = dma.done.wait [#allocation3], 4224  }
  0x14   :  { %1157 = vsyncadd [#allocation3], 4294963072  ;;  %v1165_v0 = vmov 0   ;;  %v292_v1 = vld [vmem:[%s1305_s1] sm:$0x3]  ;;  %vm129_vm0 = vcmask 130048   ;;  %v294_v26 = vlaneseq }
  0x15   :  { %1043 = vset.pattern.permute.xlu0 %v1165_v0  ;;  %v293_v2 = vcvt.s32.f32 %v292_v1  ;;  %v1045_v3 = vld [vmem:[#allocation2] sm:$0xff]   ;;  %v1047_v5 = vld [vmem:[%s1304_s0 + $0x8] sm:$0xff]   ;;  %v1050_v8 = vld [vmem:[#allocation2 + $0x50] sm:$0xff]   ;;  %v1166_v24 = vmov 1   ;;  %v1167_v49 = vmov 683565275  }
  0x16   :  { %965 = vmatprep.subr.bf16.mxu0 %v1045_v3  ;;  %v1046_v4 = vld [vmem:[%s1304_s0] sm:$0xff]   ;;  %v1048_v6 = vld [vmem:[#allocation2 + $0x48] sm:$0xff]   ;;  %v1051_v9 = vld [vmem:[#allocation2 + $0x10] sm:$0xff]   ;;  %v1233_v28 = vand.u32 127, %v294_v26  ;;  %v1168_v51 = vmov 2475754826  }
  0x17   :  { %302 = vperm.xlu0 %1043, %v293_v2   ;;  %966 = vmatpush3.bf16.msra.mxu0 %v1045_v3  ;;  %v1049_v7 = vld [vmem:[#allocation2 + $0x8] sm:$0xff]   ;;  %v1052_v10 = vld [vmem:[#allocation2 + $0x58] sm:$0xff]   ;;  %v1054_v12 = vld [vmem:[#allocation2 + $0x60] sm:$0xff]   ;;  %v1169_v54 = vmov 2131351028   ;;  %s1176_s22 = smov [#allocation5]  }
  0x18   :  { %967 = vmatprep.mubr.msk.bf16.mxu0 %vm129_vm0, %v1046_v4  ;;  %931 = vmatprep.subr.bf16.mxu0 %v1048_v6  ;;  %v1053_v11 = vld [vmem:[#allocation2 + $0x18] sm:$0xff]   ;;  %v1055_v13 = vld [vmem:[#allocation2 + $0x20] sm:$0xff]   ;;  %v1056_v14 = vld [vmem:[#allocation2 + $0x68] sm:$0xff]   ;;  %v296_v30 = vcvt.s32.f32 %v1233_v28  ;;  %v1170_v57 = vmov 2102212464   ;;  %s841_s23 = sshll.u32 %s1176_s22, 4  ;;  %s842_s23 = int_to_ptr.vmem [resolvable:$true] %s841_s23 }
  0x19   :  { %v1057_v15 = vld [vmem:[#allocation2 + $0x28] sm:$0xff]   ;;  %v1058_v16 = vld [vmem:[#allocation2 + $0x70] sm:$0xff]   ;;  %v1060_v18 = vld [vmem:[#allocation2 + $0x78] sm:$0xff]   ;;  %v1171_v60 = vmov 920167782   ;;  %s1112_s24 = scalar_lea.vmem %s842_s23, 512  ;;  %p1117_p9 = scmp.lt.s32.totalorder %s842_s23, %s842_s23 }
  0x1a   :  { %968 = vmatmul.mubr.msk.bf16.vlgmr.msra.gmra.mrb[0].mxu0 %vm129_vm0, %v1047_v5  ;;  %v1059_v17 = vld [vmem:[#allocation2 + $0x30] sm:$0xff]   ;;  %v1061_v19 = vld [vmem:[#allocation2 + $0x38] sm:$0xff]   ;;  %v1062_v20 = vld [vmem:[#allocation2 + $0x80] sm:$0xff]   ;;  %v297_v32 = vmul.f32 -0.071955785, %v296_v30  ;;  %p1113_p8 = scmp.ne.s32.totalorder %s842_s23, %s1112_s24  ;;  %p1118_p10 = scmp.lt.s32.totalorder %s1112_s24, %s1112_s24 }
  0x1b   :  { %932 = vmatpush3.bf16.msra.mxu0 %v1049_v7  ;;  %v1063_v21 = vld [vmem:[#allocation2 + $0x40] sm:$0xff]   ;;  %v1064_v22 = vld [vmem:[#allocation2 + $0xc8] sm:$0xff]   ;;  %v1065_v23 = vld [vmem:[#allocation2 + $0xd0] sm:$0xff]   ;;  %1044 = vset.pattern.permute.xlu0 %v1166_v24  ;;  %v1172_v63 = vmov 1326507024  }
  0x1c   :  { %933 = vmatprep.subr.bf16.mxu0 %v1050_v8  ;;  %756 = vperm.xlu0 %1044, %v292_v1   ;;  %v1066_v25 = vld [vmem:[#allocation2 + $0xd8] sm:$0xff]   ;;  %v1067_v27 = vld [vmem:[#allocation2 + $0xe0] sm:$0xff]   ;;  %v1068_v29 = vld [vmem:[#allocation2 + $0xe8] sm:$0xff]   ;;  %v298_v33 = vmul.f32 1.442695, %v297_v32  ;;  %p1119_p11 = por %p1118_p10, %p1117_p9 }
  0x1d   :  { %971 = vmatprep.subr.bf16.mxu1 %v1064_v22  ;;  %v1069_v31 = vld [vmem:[#allocation2 + $0xf0] sm:$0xff]   ;;  %v1070_v40 = vld [vmem:[#allocation2 + $0xf8] sm:$0xff]   ;;  %v1071_v43 = vld [vmem:[#allocation2 + $0x100] sm:$0xff]  }
  0x1e   :  { %972 = vmatpush3.bf16.msra.mxu1 %v1064_v22  ;;  %1080 = vpow2.f32 %v298_v33  ;;  %p1120_p12 = pnand %p1119_p11, %p1113_p8 }
  0x1f   :  { %934 = vmatpush3.bf16.msra.mxu0 %v1051_v9  ;;  %973 = vmatprep.subr.bf16.mxu1 %v1065_v23 }
  0x20   :  { %935 = vmatprep.subr.bf16.mxu0 %v1052_v10 }
  0x22   :  { %974 = vmatpush3.bf16.msra.mxu1 %v1065_v23 }
  0x23   :  { %936 = vmatpush3.bf16.msra.mxu0 %v1053_v11  ;;  %975 = vmatprep.subr.bf16.mxu1 %v1066_v25 }
  0x24   :  { %937 = vmatprep.subr.bf16.mxu0 %v1054_v12 }
  0x26   :  { %976 = vmatpush3.bf16.msra.mxu1 %v1066_v25 }
  0x27   :  { %938 = vmatpush3.bf16.msra.mxu0 %v1055_v13  ;;  %977 = vmatprep.subr.bf16.mxu1 %v1067_v27 }
  0x28   :  { %939 = vmatprep.subr.bf16.mxu0 %v1056_v14  ;;  %v1081_v34 = vpop.eup %1080 }
  0x2a   :  { %978 = vmatpush3.bf16.msra.mxu1 %v1067_v27 }
  0x2b   :  { %940 = vmatpush3.bf16.msra.mxu0 %v1057_v15  ;;  %979 = vmatprep.subr.bf16.mxu1 %v1068_v29 }
  0x2c   :  { %941 = vmatprep.subr.bf16.mxu0 %v1058_v16 }
  0x2e   :  { %980 = vmatpush3.bf16.msra.mxu1 %v1068_v29 }
  0x2f   :  { %942 = vmatpush3.bf16.msra.mxu0 %v1059_v17  ;;  %981 = vmatprep.subr.bf16.mxu1 %v1069_v31 }
  0x30   :  { %943 = vmatprep.subr.bf16.mxu0 %v1060_v18 }
  0x32   :  { %982 = vmatpush3.bf16.msra.mxu1 %v1069_v31 }
  0x33   :  { %944 = vmatpush3.bf16.msra.mxu0 %v1061_v19  ;;  %983 = vmatprep.subr.bf16.mxu1 %v1070_v40 }
  0x34   :  { %945 = vmatprep.subr.bf16.mxu0 %v1062_v20 }
  0x36   :  { %984 = vmatpush3.bf16.msra.mxu1 %v1070_v40 }
  0x37   :  { %946 = vmatpush3.bf16.msra.mxu0 %v1063_v21  ;;  %985 = vmatprep.subr.bf16.mxu1 %v1071_v43 }
  0x3a   :  { %986 = vmatpush3.bf16.msra.mxu1 %v1071_v43 }
  0x96   :  { %v303_v35 = vpop.permute.xlu0 %302 }
  0x97   :  { %v1236_v36 = vmul.f32 %v1081_v34, %v303_v35 }
  0x99   :  { %v309_v37 = vand.u32 2139095040, %v1236_v36  ;;  %v306_v42 = vand.u32 2147483647, %v1236_v36  ;;  %vm308_vm8 = vcmp.lt.s32.totalorder %v1236_v36, 0 }
  0x9b   :  { %v310_v38 = vshrl.u32 %v309_v37, 23  ;;  %v313_v46 = vand.u32 8388607, %v306_v42  ;;  %vm307_vm9 = vcmp.le.f32.partialorder %v306_v42, 0.7853982 }
  0x9d   :  { %v881_v39 = vadd.s32 4294967169, %v310_v38  ;;  %v314_v1 = vor.u32 8388608, %v313_v46 }
  0x9f   :  { %v316_v41 = vadd.s32 1, %v881_v39  ;;  %v354_v15 = vshll.u32 %v314_v1, 8 }
  0xa1   :  { %vm317_vm1 = vcmp.gt.s32.totalorder %v316_v41, 0 }
  0xa2   :  { %v318_v44 = vsel %vm317_vm1, %v316_v41, 0  ;;  %vm398_vm1 = vweird.f32 %v1236_v36 }
  0xa3   :  { %v320_v45 = vand.u32 31, %v318_v44  ;;  %v319_v48 = vshrl.u32 %v318_v44, 5 }
  0xa5   :  { %v321_v47 = vsub.s32 32, %v320_v45  ;;  %v323_v50 = vshll.u32 %v1167_v49, %v320_v45  ;;  %v326_v52 = vshll.u32 %v1168_v51, %v320_v45  ;;  %v329_v56 = vshll.u32 %v1169_v54, %v320_v45 }
  0xa6   :  { %v332_v59 = vshll.u32 %v1170_v57, %v320_v45  ;;  %v335_v62 = vshll.u32 %v1171_v60, %v320_v45  ;;  %vm338_vm2 = vcmp.lt.s32.totalorder %v319_v48, 1  ;;  %vm341_vm3 = vcmp.lt.s32.totalorder %v319_v48, 4 }
  0xa7   :  { %v324_v53 = vshrl.u32 %v1168_v51, %v321_v47  ;;  %v327_v55 = vshrl.u32 %v1169_v54, %v321_v47  ;;  %v330_v58 = vshrl.u32 %v1170_v57, %v321_v47  ;;  %v333_v61 = vshrl.u32 %v1171_v60, %v321_v47 }
  0xa8   :  { %v336_v0 = vshrl.u32 %v1172_v63, %v321_v47  ;;  %v322_v10 = vshrl.u32 %v1167_v49, %v321_v47  ;;  %vm340_vm4 = vcmp.lt.s32.totalorder %v319_v48, 3  ;;  %vm339_vm5 = vcmp.lt.s32.totalorder %v319_v48, 2 }
  0xa9   :  { %v325_v2 = vor.u32 %v324_v53, %v323_v50  ;;  %v328_v3 = vor.u32 %v327_v55, %v326_v52  ;;  %v331_v4 = vor.u32 %v330_v58, %v329_v56  ;;  %v334_v5 = vor.u32 %v333_v61, %v332_v59 }
  0xaa   :  { %v337_v6 = vor.u32 %v336_v0, %v335_v62 }
  0xab   :  { %v343_v7 = vsel %vm341_vm3, %v331_v4, 2102212464  ;;  %v346_v8 = vsel %vm338_vm2, %v325_v2, %v328_v3  ;;  %v350_v9 = vsel %vm338_vm2, %v328_v3, %v331_v4  ;;  %v347_v11 = vsel %vm341_vm3, %v334_v5, 920167782 }
  0xac   :  { %v351_v12 = vsel %vm341_vm3, %v337_v6, 1326507024  ;;  %v348_v13 = vsel %vm340_vm4, %v331_v4, %v347_v11  ;;  %v342_v16 = vsel %vm338_vm2, %v322_v10, %v325_v2  ;;  %v344_v17 = vsel %vm340_vm4, %v328_v3, %v343_v7  ;;  %v102_v11 = vld [vmem:[%s1307_s3] sm:$0xff] }
  0xad   :  { %v352_v14 = vsel %vm340_vm4, %v334_v5, %v351_v12  ;;  %v349_v18 = vsel %vm339_vm5, %v346_v8, %v348_v13  ;;  %v345_v24 = vsel %vm339_vm5, %v342_v16, %v344_v17  ;;  %v103_v13 = vld [vmem:[%s1307_s3 + $0x8] sm:$0xff]  ;;  %vm1175_vm3 = vmmov 0  }
  0xae   :  { %v353_v19 = vsel %vm339_vm5, %v350_v9, %v352_v14  ;;  %v1245_v22 = vmul.u32.u64.low %v354_v15, %v349_v18  ;;  %v1246_v23 = vmul.u32.u64.high %v354_v15, %v349_v18, %v1245_v22  ;;  %v361_v26 = vmul.u32 %v354_v15, %v345_v24  ;;  %v1073_v24 = vld [vmem:[#allocation2 + $0x90] sm:$0xff]  }
  0xaf   :  { %v1242_v20 = vmul.u32.u64.low %v354_v15, %v353_v19  ;;  %v1243_v21 = vmul.u32.u64.high %v354_v15, %v353_v19, %v1242_v20 }
  0xb0   :  { %v364_v25 = vadd.s32 1, %v1246_v23 }
  0xb1   :  { %vm363_vm6 = vc.u32 %v1243_v21, %v1245_v22  ;;  %v362_v40 = vadd.s32 %v1245_v22, %v1243_v21  ;;  %v1072_v22 = vld [vmem:[#allocation2 + $0x88] sm:$0xff]  }
  0xb2   :  { %v365_v27 = vsel %vm363_vm6, %v364_v25, %v1246_v23  ;;  %v1173_v23 = vmov 0.0   ;;  %v1074_v25 = vld [vmem:[#allocation2 + $0x98] sm:$0xff]  }
  0xb3   :  { %v366_v29 = vadd.s32 %v365_v27, %v361_v26  ;;  %991 = vmatprep.subr.bf16.mxu1 %v1173_v23  ;;  %v1075_v26 = vld [vmem:[#allocation2 + $0xa0] sm:$0xff]   ;;  %v1076_v27 = vld [vmem:[#allocation2 + $0xa8] sm:$0xff]  }
  0xb5   :  { %v367_v30 = vadd.s32 536870912, %v366_v29 }
  0xb7   :  { %v368_v31 = vshrl.u32 %v367_v30, 30  ;;  %v1078_v30 = vld [vmem:[#allocation2 + $0xb8] sm:$0xff]  }
  0xb9   :  { %v369_v32 = vshll.u32 %v368_v31, 30  ;;  %v392_v53 = vsub.s32 4, %v368_v31 }
  0xbb   :  { %v370_v33 = vsub.s32 %v366_v29, %v369_v32  ;;  %v393_v56 = vsel %vm308_vm8, %v392_v53, %v368_v31  ;;  %v1077_v29 = vld [vmem:[#allocation2 + $0xb0] sm:$0xff]   ;;  %v107_v31 = vld [vmem:[%s1307_s3 + $0x28] sm:$0xff] }
  0xbc   :  { %v395_v58 = vsel %vm307_vm9, 0, %v393_v56  ;;  %v108_v32 = vld [vmem:[%s1307_s3 + $0x30] sm:$0xff] }
  0xbd   :  { %v372_v34 = vsub.s32 0, %v370_v33  ;;  %v502_v59 = vadd.s32 3, %v395_v58  ;;  %v399_v60 = vand.u32 3, %v395_v58 }
  0xbf   :  { %v882_v35 = vmin.u32 %v372_v34, %v370_v33  ;;  %v503_v61 = vand.u32 3, %v502_v59  ;;  %vm404_vm10 = vcmp.eq.s32.totalorder %v399_v60, 2  ;;  %vm401_vm12 = vcmp.eq.s32.totalorder %v399_v60, 0 }
  0xc0   :  { %vm400_vm14 = vcmp.lt.s32.totalorder %v399_v60, 2  ;;  %v1019_v34 = vpack.c.bf16 %v108_v32, %v107_v31 }
  0xc1   :  { %v374_v37 = vclz %v882_v35  ;;  %vm508_vm11 = vcmp.eq.s32.totalorder %v503_v61, 2  ;;  %vm505_vm13 = vcmp.eq.s32.totalorder %v503_v61, 0  ;;  %vm504_vm15 = vcmp.lt.s32.totalorder %v503_v61, 2 }
  0xc2   :  { %v1174_v35 = vmov 0.0|0.0  }
  0xc3   :  { %v883_v38 = vadd.s32 4294967294, %v374_v37  ;;  %1018 = vmatprep.subr.bf16.mxu0 %v1174_v35  ;;  %v757_v37 = vpop.permute.xlu0 %756 }
  0xc4   :  { %vm758_vm2 = vcmp.eq.s32.totalorder %v757_v37, %v1233_v28 }
  0xc5   :  { %vm884_vm7 = vcmp.lt.s32.totalorder %v883_v38, 0 }
  0xc6   :  { %v377_v39 = vsel %vm884_vm7, 0, %v883_v38  ;;  %v916_v38 = vsel %vm758_vm2, 1.0, %v1173_v23 }
  0xc7   :  { %v378_v41 = vsub.s32 32, %v377_v39  ;;  %v382_v43 = vsub.s32 4294967266, %v377_v39  ;;  %v379_v44 = vshll.u32 %v370_v33, %v377_v39  ;;  %v1079_v33 = vld [vmem:[#allocation2 + $0xc0] sm:$0xff]  }
  0xc9   :  { %v380_v45 = vshrl.u32 %v362_v40, %v378_v41  ;;  %v383_v46 = vadd.s32 127, %v382_v43  ;;  %v889_v40 = vld [vmem:[%s1307_s3 + $0x18] ss:$0 sm:$0xff] }
  0xcb   :  { %v381_v47 = vor.u32 %v380_v45, %v379_v44  ;;  %v384_v48 = vshll.u32 %v383_v46, 23 }
  0xcd   :  { %v385_v49 = vor.u32 4788187, %v384_v48  ;;  %v388_v51 = vcvt.s32.f32 %v381_v47 }
  0xcf   :  { %v386_v50 = vand.u32 2147483647, %v385_v49 }
  0xd1   :  { %v389_v52 = vmul.f32 %v388_v51, %v386_v50 }
  0xd3   :  { %v390_v54 = vxor.u32 2147483648, %v389_v52 }
  0xd5   :  { %v391_v55 = vsel %vm308_vm8, %v390_v54, %v389_v52  ;;  %v872_v52 = vld [vmem:[%s1307_s3 + $0x10] ss:$0 sm:$0xff] }
  0xd6   :  { %v394_v57 = vsel %vm307_vm9, %v1236_v36, %v391_v55 }
  0xd7   :  { %1082 = vcosq.f32 %v394_v57 }
  0xd8   :  { %1084 = vsinq.f32 %v394_v57 }
  0xe1   :  { %v1083_v62 = vpop.eup %1082 }
  0xe2   :  { %v1085_v63 = vpop.eup %1084  ;;  %v405_v0 = vxor.u32 2147483648, %v1083_v62 }
  0xe3   :  { %v402_v1 = vxor.u32 2147483648, %v1085_v63 }
  0xe4   :  { %v406_v2 = vsel %vm404_vm10, %v405_v0, %v1085_v63  ;;  %v510_v42 = vsel %vm508_vm11, %v405_v0, %v1085_v63 }
  0xe5   :  { %v403_v3 = vsel %vm401_vm12, %v1083_v62, %v402_v1  ;;  %v507_v4 = vsel %vm505_vm13, %v1083_v62, %v402_v1 }
  0xe6   :  { %v407_v5 = vsel %vm400_vm14, %v403_v3, %v406_v2  ;;  %v511_v6 = vsel %vm504_vm15, %v507_v4, %v510_v42 }
  0xe7   :  { %v408_v7 = vsel %vm398_vm1, nan, %v407_v5  ;;  %v512_v8 = vsel %vm398_vm1, nan, %v511_v6 }
  0xe8   :  { %v513_v9 = vpack.c.bf16 %v408_v7, %v408_v7  ;;  %v514_v10 = vpack.c.bf16 %v512_v8, %v512_v8 }
  0xea   :  { %647 = vmatprep.mubr.bf16.mxu0 %v514_v10 }
  0xeb   :  { %648 = vmatmul.mubr.bf16.vlgmr.msra.gmra.mrb[4].mxu0 %v513_v9 }
  0xec   :  { %1020 = vmatpush3.bf16.msra.mxu0 %v1019_v34  ;;  %1015 = vmatprep.mubr.msk.f32.mxu0 %vm1175_vm3, %v1173_v23 }
  0xed   :  { %v969_v12 = vpop.f32.mrb[0].mxu0 }
  0xee   :  { %v179_v14 = vadd.f32 %v969_v12, %v102_v11  ;;  %v170_v15 = vpop.f32.mrb[1].mxu0 }
  0xef   :  { %v171_v36 = vadd.f32 %v170_v15, %v102_v11  ;;  %v970_v16 = vpop.f32.mrb[2].mxu0 }
  0xf0   :  { %v182_v17 = vadd.f32 %v970_v16, %v103_v13  ;;  %v173_v18 = vpop.f32.mrb[3].mxu0 }
  0xf1   :  { %v174_v19 = vadd.f32 %v173_v18, %v103_v13 }
  0xf2   :  { %v186_v20 = vpack.c.bf16 %v182_v17, %v179_v14 }
  0xf3   :  { %v185_v21 = vpack.c.bf16 %v174_v19, %v171_v36  ;;  %1016 = vmatmul.mubr.msk.f32.vlgmr.msra.gmra.mrb[8].mxu0 %vm129_vm0, %v916_v38 }
  0xf5   :  { %987 = vmatprep.mubr.bf16.mxu1 %v185_v21 }
  0xf6   :  { %988 = vmatmul.mubr.bf16.vlgmr.msra.gmra.mrb[0].mxu1 %v186_v20 }
  0xf7   :  { %992 = vmatpush3.bf16.msra.mxu1 %v1072_v22  ;;  %1007 = vmatprep.mubr.msk.bf16.mxu1 %vm1175_vm3, %v1173_v23 }
  0xf8   :  { %993 = vmatprep.subr.bf16.mxu1 %v1173_v23 }
  0xfb   :  { %994 = vmatpush3.bf16.msra.mxu1 %v1073_v24 }
  0xfc   :  { %995 = vmatprep.subr.bf16.mxu1 %v1173_v23 }
  0xff   :  { %996 = vmatpush3.bf16.msra.mxu1 %v1074_v25 }
 0x100   :  { %997 = vmatprep.subr.bf16.mxu1 %v1173_v23 }
 0x103   :  { %998 = vmatpush3.bf16.msra.mxu1 %v1075_v26 }
 0x104   :  { %999 = vmatprep.subr.bf16.mxu1 %v1173_v23 }
 0x107   :  { %1000 = vmatpush3.bf16.msra.mxu1 %v1076_v27 }
 0x108   :  { %1001 = vmatprep.subr.bf16.mxu1 %v1173_v23 }
 0x10b   :  { %1002 = vmatpush3.bf16.msra.mxu1 %v1077_v29 }
 0x10c   :  { %1003 = vmatprep.subr.bf16.mxu1 %v1173_v23 }
 0x10f   :  { %1004 = vmatpush3.bf16.msra.mxu1 %v1078_v30 }
 0x110   :  { %1005 = vmatprep.subr.bf16.mxu1 %v1173_v23 }
 0x113   :  { %1006 = vmatpush3.bf16.msra.mxu1 %v1079_v33 }
 0x1be   :  { %v947_v39 = vpop.f32.mrb[4].mxu0 }
 0x1bf   :  { %v948_v41 = vpop.f32.mrb[5].mxu0 }
 0x1c0   :  { %v949_v43 = vadd.f32 %v948_v41, %v947_v39  ;;  %v950_v44 = vpop.f32.mrb[6].mxu0 }
 0x1c1   :  { %v951_v45 = vpop.f32.mrb[7].mxu0 }
 0x1c2   :  { %v650_v46 = vadd.f32 %v949_v43, %v889_v40 }
 0x1c4   :  { %v906_v47 = vmul.f32 -1.442695, %v650_v46 }
 0x1c6   :  { %1086 = vpow2.f32 %v906_v47  ;;  %v830_v61 = vpop.f32.mrb[8].mxu0 }
 0x1c7   :  { %v1017_v62 = vpop.f32.mrb[9].mxu0 }
 0x1c9   :  { %v989_v53 = vpop.f32.mrb[0].mxu1 }
 0x1ca   :  { %v282_v54 = vadd.f32 %v989_v53, %v872_v52  ;;  %v273_v55 = vpop.f32.mrb[1].mxu1 }
 0x1cb   :  { %v274_v56 = vadd.f32 %v872_v52, %v273_v55  ;;  %v990_v57 = vpop.f32.mrb[2].mxu1 }
 0x1cc   :  { %290 = vst [vmem:[#allocation5 + $0x10] sm:$0xff] %v282_v54  ;;  %v285_v58 = vadd.f32 %v990_v57, %v872_v52  ;;  %v276_v59 = vpop.f32.mrb[3].mxu1 }
 0x1cd   :  { %288 = vst [vmem:[#allocation5] sm:$0xff] %v274_v56  ;;  %v277_v60 = vadd.f32 %v872_v52, %v276_v59 }
 0x1ce   :  { %291 = vst [vmem:[#allocation5 + $0x18] sm:$0xff] %v285_v58 }
 0x1cf   :  { %289 = vst [vmem:[#allocation5 + $0x8] sm:$0xff] %v277_v60 }
 0x1d0   :  { %v1087_v48 = vpop.eup %1086 }
 0x1d1   :  { %v658_v28 = vadd.f32 1.0, %v1087_v48 }
 0x1d3   :  { %1088 = vrcp.f32 %v658_v28 }
 0x1dd   :  { %v1089_v49 = vpop.eup %1088 }
 0x1de   :  { %v661_v50 = vmul.f32 %v1089_v49, %v650_v46 }
 0x1e0   :  { %v662_v51 = vpack.c.bf16 %v661_v50, %v661_v50 }
 0x1e2   :  { %1008 = vmatmul.mubr.bf16.vlgmr.msra.gmra.mrb[4].mxu1 %v662_v51 }
 0x1e3   :  { %1123 = shalt.err (!%p1120_p12)
}
 0x1e4   :  { %s1124_s27 = scalar_lea.hbm %s1308_s4, 512 }
 0x1e5   :  { %p1125_p13 = scmp.ne.s32.totalorder %s1308_s4, %s1124_s27  ;;  %p1128_p0 = scmp.lt.u32.totalorder %s1124_s27, %s1308_s4 }
 0x1e7   :  { %p1130_p1 = pnand %p1128_p0, %p1125_p13 }
 0x1e9   :  { %1133 = shalt.err (!%p1130_p1)
}
 0x1ea   :  { %s1177_s7 = smov 128   ;;  %s1178_s8 = smov 8   ;;  %v907_v63 = vld [vmem:[%s1307_s3 + $0x20] ss:$0 sm:$0xff] }
 0x1eb   :  { %847 = dma.vmem_to_hbm [thread:$0]  %s842_s23, 512, %s1308_s4, [#allocation4], %s1177_s7, %s1177_s7, %s1178_s8  }
 0x1ec   :  { %s1179_s0 = smov [#allocation6]  }
 0x1ed   :  { %s854_s1 = sshll.u32 %s1179_s0, 4  ;;  %s855_s1 = int_to_ptr.vmem [resolvable:$true] %s854_s1 }
 0x1ee   :  { %s1134_s12 = scalar_lea.vmem %s855_s1, 32  ;;  %p1139_p3 = scmp.lt.s32.totalorder %s855_s1, %s855_s1 }
 0x1ef   :  { %p1135_p2 = scmp.ne.s32.totalorder %s855_s1, %s1134_s12  ;;  %p1140_p4 = scmp.lt.s32.totalorder %s1134_s12, %s1134_s12 }
 0x1f1   :  { %p1141_p5 = por %p1140_p4, %p1139_p3 }
 0x1f3   :  { %p1142_p6 = pnand %p1141_p5, %p1135_p2 }
 0x2b5   :  { %v749_v0 = vpop.f32.mrb[4].mxu1 }
 0x2b6   :  { %v750_v1 = vadd.f32 %v907_v63, %v749_v0  ;;  %v1009_v2 = vpop.f32.mrb[5].mxu1 }
 0x2b7   :  { %v752_v42 = vpop.f32.mrb[6].mxu1 }
 0x2b8   :  { %v834_v3 = vadd.f32 %v830_v61, %v750_v1  ;;  %v1010_v4 = vpop.f32.mrb[7].mxu1 }
 0x2ba   :  { %835 = vst [vmem:[#allocation6] sm:$0x3] %v834_v3 }
 0x2bb   :  { %1145 = shalt.err (!%p1142_p6)
}
 0x2bc   :  { %s1146_s3 = scalar_lea.hbm %s1309_s5, 32 }
 0x2bd   :  { %p1147_p7 = scmp.ne.s32.totalorder %s1309_s5, %s1146_s3  ;;  %p1150_p8 = scmp.lt.u32.totalorder %s1146_s3, %s1309_s5 }
 0x2bf   :  { %p1152_p9 = pnand %p1150_p8, %p1147_p7 }
 0x2c1   :  { %1155 = shalt.err (!%p1152_p9)
}
 0x2c2   :  { %857 = dma.vmem_to_hbm [thread:$0]  %s855_s1, 32, %s1309_s5, [#allocation7]  }
 0x2c3   :  { %1158 = dma.done.wait [#allocation4], 512  }
 0x2c4   :  { %1159 = vsyncadd [#allocation4], 4294966784 }
 0x2c5   :  { %1160 = dma.done.wait [#allocation7], 32  }
 0x2c6   :  { %1161 = vsyncadd [#allocation7], 4294967264 }
 0x2c7   :  { %864 = vsyncpa [#allocation3], 1 }
 0x2c8   :  { %865 = vsyncpa [#allocation4], 1 }
 0x2c9   :  { %866 = vsyncpa [#allocation7], 1 }

</bundles_post_ra>
